<compile_context>
chip_gen: v5e
topology: v5e:2x2
jax: 0.10.0
libtpu: 0.0.40
codegen_flags: <defaults>
</compile_context>

<pallas_src>
import functools

import jax
import jax.numpy as jnp
from jax.experimental import pallas as pl
from jax.experimental.pallas import tpu as pltpu

_LANE = 128
_SUB = 8


def _bce_dice_kernel(pred_ref, targ_ref, out_ref, acc_ref, *,
                     rows_total, tile_r, needs_mask):
    """Streams one batch row and accumulates the four sums the loss needs.

    acc_ref (VMEM, (4, 8, 128) f32):
      [0] sum of log(1-p) + t*(log p - log(1-p))   (== minus the BCE term)
      [1] sum of p
      [2] sum of t
      [3] sum of p * t
    """
    j = pl.program_id(1)
    nj = pl.num_programs(1)

    @pl.when(j == 0)
    def _():
        acc_ref[...] = jnp.zeros_like(acc_ref)

    def accumulate(p, t):
        # nn.BCELoss semantics: logs clamped at -100.
        log_p = jnp.maximum(jnp.log(p), -100.0)
        log_1mp = jnp.maximum(jnp.log(1.0 - p), -100.0)
        s = log_1mp + t * (log_p - log_1mp)          # == -(bce term), 3 VALU ops

        g = tile_r // _SUB
        # Layout-preserving split of the sublane axis: the per-step reduction
        # over the leading (vreg-count) axis is pure elementwise VPU adds into
        # fully occupied (8, 128) accumulators.
        acc_ref[0] += s.reshape(g, _SUB, _LANE).sum(axis=0)
        acc_ref[1] += p.reshape(g, _SUB, _LANE).sum(axis=0)
        acc_ref[2] += t.reshape(g, _SUB, _LANE).sum(axis=0)
        acc_ref[3] += (p * t).reshape(g, _SUB, _LANE).sum(axis=0)

    p = pred_ref[0].astype(jnp.float32)   # (tile_r, 128)
    t = targ_ref[0].astype(jnp.float32)

    if needs_mask:
        # Only the last row step can be ragged; keep the main path mask-free.
        @pl.when(j < nj - 1)
        def _():
            accumulate(p, t)

        @pl.when(j == nj - 1)
        def _():
            rows_valid = rows_total - j * tile_r
            row_ids = jax.lax.broadcasted_iota(jnp.int32, (tile_r, _LANE), 0)
            mask = row_ids < rows_valid
            # pred=0 / target=0 in the out-of-range region contributes exactly
            # 0 to every accumulated sum (and kills any OOB garbage/NaN).
            accumulate(jnp.where(mask, p, 0.0), jnp.where(mask, t, 0.0))
    else:
        accumulate(p, t)

    @pl.when(j == nj - 1)
    def _():
        out_ref[0] = acc_ref[...]


def bce_dice_loss(pred, target, wb=1.0, wd=1.0, *, block_bytes=4 << 20):
    """pred, target: (B, ...); pred is a probability in (0, 1) (nn.BCELoss).

    Returns the scalar f32 loss wd * dice + wb * bce.
    """
    assert pred.shape == target.shape
    B = pred.shape[0]
    N = 1
    for d in pred.shape[1:]:
        N *= d
    p2 = pred.reshape(B, N)
    t2 = target.reshape(B, N)

    rem = N % _LANE
    if rem:
        # Rare non-lane-aligned case: pad only the sub-128 remainder.
        p2 = jnp.pad(p2, ((0, 0), (0, _LANE - rem)))
        t2 = jnp.pad(t2, ((0, 0), (0, _LANE - rem)))
    R = p2.shape[1] // _LANE
    p3 = p2.reshape(B, R, _LANE)          # free reshape when N % 128 == 0
    t3 = t2.reshape(B, R, _LANE)

    # Sublane packing multiple for the narrowest input dtype (8 f32, 16 bf16,
    # 32 int8/fp8); tile sized off the real itemsize so bf16 gets full tiles.
    p_item = jnp.dtype(pred.dtype).itemsize
    t_item = jnp.dtype(target.dtype).itemsize
    sub = _SUB * max(1, 4 // min(p_item, t_item))
    max_item = max(p_item, t_item)

    tile_r = max(sub, (block_bytes // (_LANE * max_item)) // sub * sub)
    tile_r = min(tile_r, pl.cdiv(R, sub) * sub)
    row_steps = pl.cdiv(R, tile_r)
    needs_mask = (R % tile_r) != 0

    # 2 inputs x 2 pipeline buffers + headroom for scratch/output/internal.
    # Explicitly above the v5e 16 MiB scoped default, capped for v7x's 64 MiB.
    block_in_bytes = tile_r * _LANE * (p_item + t_item)
    vmem_limit = int(max(16 << 20, min(2 * block_in_bytes + (8 << 20), 48 << 20)))

    kernel = functools.partial(
        _bce_dice_kernel,
        rows_total=int(R), tile_r=int(tile_r), needs_mask=bool(needs_mask))

    partials = pl.pallas_call(
        kernel,
        out_shape=jax.ShapeDtypeStruct((B, 4, _SUB, _LANE), jnp.float32),
        grid_spec=pltpu.PrefetchScalarGridSpec(
            num_scalar_prefetch=0,
            grid=(B, row_steps),
            in_specs=[
                pl.BlockSpec((1, tile_r, _LANE), lambda b, j: (b, j, 0)),
                pl.BlockSpec((1, tile_r, _LANE), lambda b, j: (b, j, 0)),
            ],
            out_specs=pl.BlockSpec((1, 4, _SUB, _LANE),
                                   lambda b, j: (b, 0, 0, 0)),
            scratch_shapes=[pltpu.VMEM((4, _SUB, _LANE), jnp.float32)],
        ),
        compiler_params=pltpu.CompilerParams(
            dimension_semantics=("parallel", "arbitrary"),
            vmem_limit_bytes=vmem_limit),
    )(p3, t3)

    # Tiny final combine (B*4 values) outside the kernel.
    sums = partials.sum(axis=(2, 3))                        # (B, 4)
    bce = -jnp.sum(sums[:, 0]) / (B * N)                    # mean over true B*N
    smooth = 1.0
    dice_score = (2.0 * sums[:, 3] + smooth) / (sums[:, 1] + sums[:, 2] + smooth)
    dice_loss = 1.0 - jnp.sum(dice_score) / B
    return wd * dice_loss + wb * bce


def _reference(pred, target, wb=1.0, wd=1.0):
    B = pred.shape[0]
    p = pred.reshape(B, -1).astype(jnp.float32)
    t = target.reshape(B, -1).astype(jnp.float32)
    bce = jnp.mean(-(t * jnp.maximum(jnp.log(p), -100.0)
                     + (1 - t) * jnp.maximum(jnp.log(1 - p), -100.0)))
    inter = (p * t).sum(1)
    dice_score = (2 * inter + 1.0) / (p.sum(1) + t.sum(1) + 1.0)
    dice = 1.0 - dice_score.sum() / B
    return wd * dice + wb * bce


if __name__ == "__main__":
    key = jax.random.PRNGKey(0)
    k1, k2 = jax.random.split(key)
    B, C, H, W = 2, 4, 16, 16

    # pred must be a probability (as required by nn.BCELoss).
    pred = jax.nn.sigmoid(jax.random.normal(k1, (B, C, H, W), jnp.float32))
    target = (jax.random.uniform(k2, (B, C, H, W)) > 0.5).astype(jnp.float32)

    loss = bce_dice_loss(pred, target, wb=1.0, wd=1.0)
    jax.block_until_ready(loss)

    ref = _reference(pred, target)
    assert jnp.allclose(loss, ref, rtol=1e-5, atol=1e-5), (loss, ref)
    print("KERNEL_OK")
</pallas_src>

<mosaic_0001>
module attributes {stable_mosaic.version = 11 : i64} {
  func.func @_bce_dice_kernel(%arg0: i32, %arg1: i32, %arg2: memref<1x8x128xf32, #tpu.memory_space<vmem>>, %arg3: memref<1x8x128xf32, #tpu.memory_space<vmem>>, %arg4: memref<1x4x8x128xf32, #tpu.memory_space<vmem>>, %arg5: memref<4x8x128xf32, #tpu.memory_space<vmem>>) attributes {dimension_semantics = [#tpu.dimension_semantics<parallel>, #tpu.dimension_semantics<arbitrary>], iteration_bounds = array<i64: 2, 1>, scalar_prefetch = 0 : i64, scratch_operands = 1 : i64, tpu.core_type = #tpu.core_type<tc>, window_params = [{transform_indices = @transform_0, window_bounds = array<i64: 1, 8, 128>}, {transform_indices = @transform_1, window_bounds = array<i64: 1, 8, 128>}, {transform_indices = @transform_2, window_bounds = array<i64: 1, 4, 8, 128>}]} {
    %c0_i32 = arith.constant 0 : i32
    %0 = arith.cmpi eq, %arg1, %c0_i32 : i32
    %1 = arith.extui %0 : i1 to i32
    %c0_i32_0 = arith.constant 0 : i32
    %2 = arith.cmpi ne, %1, %c0_i32_0 : i32
    scf.if %2 {
      %cst_35 = arith.constant 0.000000e+00 : f32
      %54 = vector.broadcast %cst_35 : f32 to vector<4x8x128xf32>
      %c0_36 = arith.constant 0 : index
      %c0_37 = arith.constant 0 : index
      %c0_38 = arith.constant 0 : index
      %55 = vector.load %arg5[%c0_36, %c0_37, %c0_38] : memref<4x8x128xf32, #tpu.memory_space<vmem>>, vector<4x8x128xf32>
      tpu.vector_store %arg5[%c0_36, %c0_37, %c0_38], %54 {strides = array<i32>} : memref<4x8x128xf32, #tpu.memory_space<vmem>>, vector<4x8x128xf32>,
    } else {
    }
    %c0 = arith.constant 0 : index
    %c0_1 = arith.constant 0 : index
    %c0_2 = arith.constant 0 : index
    %3 = vector.load %arg2[%c0, %c0_1, %c0_2] : memref<1x8x128xf32, #tpu.memory_space<vmem>>, vector<1x8x128xf32>
    %4 = vector.shape_cast %3 : vector<1x8x128xf32> to vector<8x128xf32>
    %c0_3 = arith.constant 0 : index
    %c0_4 = arith.constant 0 : index
    %c0_5 = arith.constant 0 : index
    %5 = vector.load %arg3[%c0_3, %c0_4, %c0_5] : memref<1x8x128xf32, #tpu.memory_space<vmem>>, vector<1x8x128xf32>
    %6 = vector.shape_cast %5 : vector<1x8x128xf32> to vector<8x128xf32>
    %7 = math.log %4 : vector<8x128xf32>
    %cst = arith.constant -1.000000e+02 : f32
    %8 = vector.broadcast %cst : f32 to vector<8x128xf32>
    %9 = arith.maximumf %7, %8 : vector<8x128xf32>
    %cst_6 = arith.constant 1.000000e+00 : f32
    %10 = vector.broadcast %cst_6 : f32 to vector<8x128xf32>
    %11 = arith.subf %10, %4 : vector<8x128xf32>
    %12 = math.log %11 : vector<8x128xf32>
    %cst_7 = arith.constant -1.000000e+02 : f32
    %13 = vector.broadcast %cst_7 : f32 to vector<8x128xf32>
    %14 = arith.maximumf %12, %13 : vector<8x128xf32>
    %15 = arith.subf %9, %14 : vector<8x128xf32>
    %16 = arith.mulf %6, %15 : vector<8x128xf32>
    %17 = arith.addf %14, %16 : vector<8x128xf32>
    %c0_8 = arith.constant 0 : index
    %c0_9 = arith.constant 0 : index
    %c0_10 = arith.constant 0 : index
    %18 = vector.load %arg5[%c0_8, %c0_9, %c0_10] : memref<4x8x128xf32, #tpu.memory_space<vmem>>, vector<1x8x128xf32>
    %19 = vector.shape_cast %18 : vector<1x8x128xf32> to vector<8x128xf32>
    %20 = vector.shape_cast %17 : vector<8x128xf32> to vector<1x8x128xf32>
    %cst_11 = arith.constant dense<0.000000e+00> : vector<8x128xf32>
    %21 = vector.multi_reduction <add>, %20, %cst_11 [0] : vector<1x8x128xf32> to vector<8x128xf32>
    %22 = arith.addf %19, %21 : vector<8x128xf32>
    %c0_12 = arith.constant 0 : index
    %c0_13 = arith.constant 0 : index
    %c0_14 = arith.constant 0 : index
    %23 = vector.load %arg5[%c0_12, %c0_13, %c0_14] : memref<4x8x128xf32, #tpu.memory_space<vmem>>, vector<1x8x128xf32>
    %24 = vector.shape_cast %23 : vector<1x8x128xf32> to vector<8x128xf32>
    %25 = vector.shape_cast %22 : vector<8x128xf32> to vector<1x8x128xf32>
    tpu.vector_store %arg5[%c0_12, %c0_13, %c0_14], %25 {strides = array<i32>} : memref<4x8x128xf32, #tpu.memory_space<vmem>>, vector<1x8x128xf32>,
    %c1 = arith.constant 1 : index
    %c0_15 = arith.constant 0 : index
    %c0_16 = arith.constant 0 : index
    %26 = vector.load %arg5[%c1, %c0_15, %c0_16] : memref<4x8x128xf32, #tpu.memory_space<vmem>>, vector<1x8x128xf32>
    %27 = vector.shape_cast %26 : vector<1x8x128xf32> to vector<8x128xf32>
    %28 = vector.shape_cast %4 : vector<8x128xf32> to vector<1x8x128xf32>
    %cst_17 = arith.constant dense<0.000000e+00> : vector<8x128xf32>
    %29 = vector.multi_reduction <add>, %28, %cst_17 [0] : vector<1x8x128xf32> to vector<8x128xf32>
    %30 = arith.addf %27, %29 : vector<8x128xf32>
    %c1_18 = arith.constant 1 : index
    %c0_19 = arith.constant 0 : index
    %c0_20 = arith.constant 0 : index
    %31 = vector.load %arg5[%c1_18, %c0_19, %c0_20] : memref<4x8x128xf32, #tpu.memory_space<vmem>>, vector<1x8x128xf32>
    %32 = vector.shape_cast %31 : vector<1x8x128xf32> to vector<8x128xf32>
    %33 = vector.shape_cast %30 : vector<8x128xf32> to vector<1x8x128xf32>
    tpu.vector_store %arg5[%c1_18, %c0_19, %c0_20], %33 {strides = array<i32>} : memref<4x8x128xf32, #tpu.memory_space<vmem>>, vector<1x8x128xf32>,
    %c2 = arith.constant 2 : index
    %c0_21 = arith.constant 0 : index
    %c0_22 = arith.constant 0 : index
    %34 = vector.load %arg5[%c2, %c0_21, %c0_22] : memref<4x8x128xf32, #tpu.memory_space<vmem>>, vector<1x8x128xf32>
    %35 = vector.shape_cast %34 : vector<1x8x128xf32> to vector<8x128xf32>
    %36 = vector.shape_cast %6 : vector<8x128xf32> to vector<1x8x128xf32>
    %cst_23 = arith.constant dense<0.000000e+00> : vector<8x128xf32>
    %37 = vector.multi_reduction <add>, %36, %cst_23 [0] : vector<1x8x128xf32> to vector<8x128xf32>
    %38 = arith.addf %35, %37 : vector<8x128xf32>
    %c2_24 = arith.constant 2 : index
    %c0_25 = arith.constant 0 : index
    %c0_26 = arith.constant 0 : index
    %39 = vector.load %arg5[%c2_24, %c0_25, %c0_26] : memref<4x8x128xf32, #tpu.memory_space<vmem>>, vector<1x8x128xf32>
    %40 = vector.shape_cast %39 : vector<1x8x128xf32> to vector<8x128xf32>
    %41 = vector.shape_cast %38 : vector<8x128xf32> to vector<1x8x128xf32>
    tpu.vector_store %arg5[%c2_24, %c0_25, %c0_26], %41 {strides = array<i32>} : memref<4x8x128xf32, #tpu.memory_space<vmem>>, vector<1x8x128xf32>,
    %c3 = arith.constant 3 : index
    %c0_27 = arith.constant 0 : index
    %c0_28 = arith.constant 0 : index
    %42 = vector.load %arg5[%c3, %c0_27, %c0_28] : memref<4x8x128xf32, #tpu.memory_space<vmem>>, vector<1x8x128xf32>
    %43 = vector.shape_cast %42 : vector<1x8x128xf32> to vector<8x128xf32>
    %44 = arith.mulf %4, %6 : vector<8x128xf32>
    %45 = vector.shape_cast %44 : vector<8x128xf32> to vector<1x8x128xf32>
    %cst_29 = arith.constant dense<0.000000e+00> : vector<8x128xf32>
    %46 = vector.multi_reduction <add>, %45, %cst_29 [0] : vector<1x8x128xf32> to vector<8x128xf32>
    %47 = arith.addf %43, %46 : vector<8x128xf32>
    %c3_30 = arith.constant 3 : index
    %c0_31 = arith.constant 0 : index
    %c0_32 = arith.constant 0 : index
    %48 = vector.load %arg5[%c3_30, %c0_31, %c0_32] : memref<4x8x128xf32, #tpu.memory_space<vmem>>, vector<1x8x128xf32>
    %49 = vector.shape_cast %48 : vector<1x8x128xf32> to vector<8x128xf32>
    %50 = vector.shape_cast %47 : vector<8x128xf32> to vector<1x8x128xf32>
    tpu.vector_store %arg5[%c3_30, %c0_31, %c0_32], %50 {strides = array<i32>} : memref<4x8x128xf32, #tpu.memory_space<vmem>>, vector<1x8x128xf32>,
    %c0_i32_33 = arith.constant 0 : i32
    %51 = arith.cmpi eq, %arg1, %c0_i32_33 : i32
    %52 = arith.extui %51 : i1 to i32
    %c0_i32_34 = arith.constant 0 : i32
    %53 = arith.cmpi ne, %52, %c0_i32_34 : i32
    scf.if %53 {
      %c0_35 = arith.constant 0 : index
      %c0_36 = arith.constant 0 : index
      %c0_37 = arith.constant 0 : index
      %54 = vector.load %arg5[%c0_35, %c0_36, %c0_37] : memref<4x8x128xf32, #tpu.memory_space<vmem>>, vector<4x8x128xf32>
      %c0_38 = arith.constant 0 : index
      %c0_39 = arith.constant 0 : index
      %c0_40 = arith.constant 0 : index
      %c0_41 = arith.constant 0 : index
      %55 = vector.load %arg4[%c0_38, %c0_39, %c0_40, %c0_41] : memref<1x4x8x128xf32, #tpu.memory_space<vmem>>, vector<1x4x8x128xf32>
      %56 = vector.shape_cast %55 : vector<1x4x8x128xf32> to vector<4x8x128xf32>
      %57 = vector.shape_cast %54 : vector<4x8x128xf32> to vector<1x4x8x128xf32>
      tpu.vector_store %arg4[%c0_38, %c0_39, %c0_40, %c0_41], %57 {strides = array<i32>} : memref<1x4x8x128xf32, #tpu.memory_space<vmem>>, vector<1x4x8x128xf32>,
    } else {
    }
    return
  }
  func.func @transform_0(%arg0: i32, %arg1: i32) -> (i32, i32, i32) {
    %c0_i32 = arith.constant 0 : i32
    %c0_i32_0 = arith.constant 0 : i32
    return %arg0, %arg1, %c0_i32 : i32, i32, i32
  }
  func.func @transform_1(%arg0: i32, %arg1: i32) -> (i32, i32, i32) {
    %c0_i32 = arith.constant 0 : i32
    %c0_i32_0 = arith.constant 0 : i32
    return %arg0, %arg1, %c0_i32 : i32, i32, i32
  }
  func.func @transform_2(%arg0: i32, %arg1: i32) -> (i32, i32, i32, i32) {
    %c0_i32 = arith.constant 0 : i32
    %c0_i32_0 = arith.constant 0 : i32
    %c0_i32_1 = arith.constant 0 : i32
    %c0_i32_2 = arith.constant 0 : i32
    return %arg0, %c0_i32, %c0_i32_0, %c0_i32_1 : i32, i32, i32, i32
  }
}

</mosaic_0001>

<bundles_post_ra>
// kernel: tpu_custom_call.1
= control target key start
LH: loop header
LB: loop body
LE: loop exit
PB: predicated region body
PF: predicated region fallthrough
CT: control target
= control target key end

     0   :  { %7 = vsyncpa [#allocation4], 0  ;;  %s776_s0 = inlined_call_operand.hbm [shape: f32[2,8,128], index: 0, kind: input, shape index: {}]   ;;  %s777_s1 = inlined_call_operand.hbm [shape: f32[2,8,128], index: 1, kind: input, shape index: {}]   ;;  %s778_s2 = inlined_call_operand.hbm [shape: f32[2,4,8,128], index: 2, kind: output, shape index: {}]  }
   0x1   :  { %9 = vsyncpa [#allocation4 + $0x1], 0 }
   0x2   :  { %10 = vsyncpa [#allocation7], 0 }
   0x3   :  { %12 = vsyncpa [#allocation7 + $0x1], 0 }
   0x4   :  { %13 = vsyncpa [#allocation5], 0 }
   0x5   :  { %15 = vsyncpa [#allocation5 + $0x1], 0  ;;  %s647_s9 = smov 0   ;;  %s649_s10 = smov 0  }
   0x6   :  { %s651_s11 = smov 0   ;;  %s653_s12 = smov 0  }
   0x7   :  { %s655_s13 = smov 0   ;;  %s657_s14 = smov 0  }
   0x8 LB: > { %s391_s15 = sadd.s32 4294967295, %s628_s14   ;;  %s392_s16 = sadd.s32 4294967294, %s628_s14   ;;  %s628_s14 = sphi %s657_s14, %s21_s14   ;;  %s624_s13 = sphi %s655_s13, %s787_s13   ;;  %s620_s12 = sphi %s653_s12, %s786_s12   ;;  %s616_s11 = sphi %s651_s11, %s785_s11   ;;  %s612_s10 = sphi %s649_s10, %s784_s10   ;;  %s608_s9 = sphi %s647_s9, %s783_s9  }
   0x9   : > { %s33_s17 = sadd.s32 1, %s624_s13  ;;  %s42_s18 = sadd.s32 1, %s616_s11 }
   0xa   : > { %p35_p0 = scmp.ge.s32.totalorder %s33_s17, 2  ;;  %p49_p1 = scmp.ne.s32.totalorder %s616_s11, %s612_s10 }
   0xb   : > { %p50_p2 = scmp.eq.s32.totalorder %s628_s14, 0  ;;  %p55_p3 = scmp.ne.s32.totalorder %s612_s10, %s608_s9 }
   0xc   : > { %s789_s17 = smov (%p35_p0, %s33_s17), 0  ;;  %p56_p5 = scmp.eq.s32.totalorder %s391_s15, 0 }
   0xd   : > { %p688_p4 = por %p50_p2, %p49_p1  ;;  %s37_s20 = ssub.s32 %s624_s13, %s789_s17 }
   0xe   : > { %p107_p6 = scmp.eq.s32.totalorder %s391_s15, 1  ;;  %p40_p7 = scmp.eq.s32.totalorder %s37_s20, 0 }
   0xf   : > { %p694_p8 = por %p56_p5, %p55_p3  ;;  %p113_p10 = scmp.eq.s32.totalorder %s392_s16, 1 }
  0x10   : > { %p698_p9 = por %p107_p6, %p49_p1  ;;  %p394_p12 = scmp.ge.s32.totalorder %s628_s14, 2 }
  0x11   : > { %s703_s23 = scalar_select %p40_p7, %s616_s11, %s42_s18  }
  0x12   : > { %p705_p11 = por %p113_p10, %p55_p3  ;;  %p426_p13 = scmp.lt.s32.totalorder %s628_s14, 2 }
  0x13   : > { %s133_s25 = sand.u32 1, %s616_s11   ;;  %s396_s27 = sshll.u32 %s624_s13, 3 }
  0x14   : > { %s395_s26 = sshll.u32 %s133_s25, 3  ;;  %s142_s30 = scalar_lea.hbm %s776_s0, %s396_s27 }
  0x15   : > { %s137_s3 = scalar_lea.vmem [#allocation3], %s395_s26  ;;  %s144_s5 = sshll.u32 %s142_s30, 4  ;;  %s145_s5 = int_to_ptr.hbm [resolvable:$true] %s144_s5 }
  0x16   : > { %s146_s4 = sshll.u32 %s137_s3, 4  ;;  %p416_p0 = pnand %p426_p13, %p688_p4  ;;  %s147_s4 = int_to_ptr.vmem [resolvable:$true] %s146_s4 }
  0x17   : > { %p399_p1 = scmp.ge.s32.totalorder %s628_s14, 1  ;;  %p171_p2 = scmp.lt.s32.totalorder %s628_s14, 3 }
  0x18   : > { %s134_s6 = scalar_lea.sflag [#allocation4], %s133_s25  ;;  %s162_s15 = scalar_lea.hbm %s777_s1, %s396_s27 }
  0x19   : > { %418 = dma.hbm_to_vmem [thread:$0]  (!%p416_p0), %s145_s5, 128, %s147_s4, %s134_s6  }
  0x1a   : > { %p172_p3 = pnand %p399_p1, %p171_p2  ;;  %s157_s16 = scalar_lea.vmem [#allocation6], %s395_s26 }
  0x1b   : > { %s166_s18 = sshll.u32 %s157_s16, 4  ;;  %s164_s20 = sshll.u32 %s162_s15, 4  ;;  %s167_s18 = int_to_ptr.vmem [resolvable:$true] %s166_s18  ;;  %s165_s20 = int_to_ptr.hbm [resolvable:$true] %s164_s20 }
  0x1c   : > { %s154_s28 = scalar_lea.sflag [#allocation7], %s133_s25  ;;  %175 = sbr.rel (%p172_p3) target bundleno = 60 (0x3c), region = 28 }
  0x1d   : > { %421 = dma.hbm_to_vmem [thread:$0]  (!%p416_p0), %s165_s20, 128, %s167_s18, %s154_s28  }
  0x1e   : > { %s724_s19 = sand.u32 (!%p172_p3), 1, %s612_s10  }
  0x1f   : > { %s400_s29 = sshll.u32 (!%p172_p3), %s724_s19, 3  ;;  %s178_s30 = scalar_lea.sflag (!%p172_p3), [#allocation4], %s724_s19 }
  0x20   : > { %s181_s3 = scalar_lea.vmem (!%p172_p3), [#allocation3], %s400_s29 }
  0x21   : > { %595 = dma.done.wait (%p694_p8), %s178_s30, 128  }
  0x22   : > { %597 = vsyncadd (%p694_p8), %s178_s30, 4294967168  ;;  %s188_s26 = scalar_lea.sflag [#allocation7], %s724_s19  ;;  %s191_s25 = scalar_lea.vmem [#allocation6], %s400_s29 }
  0x23   : > { %599 = dma.done.wait (%p694_p8), %s188_s26, 128  }
  0x24   : > { %601 = vsyncadd (%p694_p8), %s188_s26, 4294967168  ;;  %s402_s27 = sshll.u32 %s724_s19, 5  ;;  %v226_v0 = vld [vmem:[%s181_s3] sm:$0xff]  ;;  %v227_v1 = vld [vmem:[%s191_s25] sm:$0xff]  ;;  %s408_s5 = sshll.u32 %s620_s12, 5 }
  0x25   : > { %478 = vlog2.f32 %v226_v0  ;;  %v231_v2 = vsub.f32 1.0, %v226_v0  ;;  %s217_s4 = scalar_lea.vmem [#allocation8], %s402_s27  ;;  %v254_v3 = vmul.f32 %v227_v1, %v226_v0  ;;  %s281_s7 = scalar_lea.hbm %s778_s2, %s408_s5 }
  0x26   : > { %266 = vst [vmem:[%s217_s4 + $0x8] sm:$0xff] %v226_v0  ;;  %s282_s8 = sshll.u32 %s217_s4, 4  ;;  %s284_s15 = sshll.u32 %s281_s7, 4  ;;  %s283_s8 = int_to_ptr.vmem [resolvable:$true] %s282_s8  ;;  %s285_s15 = int_to_ptr.hbm [resolvable:$true] %s284_s15 }
  0x27   : > { %267 = vst [vmem:[%s217_s4 + $0x10] sm:$0xff] %v227_v1  ;;  %480 = vlog2.f32 %v231_v2  ;;  %s270_s16 = scalar_lea.sflag [#allocation5], %s724_s19  ;;  %s556_s18 = sshra.s32 %s285_s15, 4  ;;  %s557_s18 = int_to_ptr.hbm [resolvable:$true] %s556_s18 }
  0x28   : > { %268 = vst [vmem:[%s217_s4 + $0x18] sm:$0xff] %v254_v3  ;;  %s558_s12 = scalar_lea.hbm %s557_s18, 32  ;;  %s562_s29 = scalar_lea.hbm %s778_s2, 64 }
  0x29   : > { %p559_p4 = scmp.ne.s32.totalorder %s557_s18, %s558_s12  ;;  %p563_p7 = scmp.lt.s32.totalorder %s557_s18, %s778_s2 }
  0x2a   : > { %p564_p8 = scmp.lt.s32.totalorder %s562_s29, %s558_s12 }
  0x2b   : > { %v479_v4 = vpop.eup %478  ;;  %p560_p5 = pnand %p559_p4, %p698_p9 }
  0x2c   : > { %v229_v5 = vmul.f32 0.6931472, %v479_v4  ;;  %p565_p10 = por %p564_p8, %p563_p7 }
  0x2d   : > { %v481_v6 = vpop.eup %480  ;;  %p561_p6 = pneg %p560_p5 }
  0x2e   : > { %v230_v7 = vmax.f32 %v229_v5, -100.0  ;;  %v233_v8 = vmul.f32 0.6931472, %v481_v6 }
  0x2f   : > { %p566_p13 = pnand %p565_p10, %p561_p6 }
  0x30   : > { %v234_v9 = vmax.f32 %v233_v8, -100.0 }
  0x32   : > { %v235_v10 = vsub.f32 %v230_v7, %v234_v9 }
  0x34   : > { %v236_v11 = vmul.f32 %v235_v10, %v227_v1 }
  0x36   : > { %v237_v12 = vadd.f32 %v236_v11, %v234_v9 }
  0x38   : > { %265 = vst [vmem:[%s217_s4] sm:$0xff] %v237_v12 }
  0x39   : > { %569 = shalt.err (!%p566_p13)
}
  0x3a   : > { %s630_s19 = smov 128   ;;  %s631_s26 = smov 8  }
  0x3b   : > { %413 = dma.vmem_to_hbm [thread:$0]  (%p698_p9), %s283_s8, 512, %s285_s15, %s270_s16, %s630_s19, %s630_s19, %s631_s26  }
  0x3c PF: > { %s299_s25 = sand.u32 1, %s608_s9   ;;  %p423_p0 = pnand %p394_p12, %p705_p11 }
  0x3d   : > { %s300_s27 = scalar_lea.sflag [#allocation5], %s299_s25 }
  0x3e   : > { %p424_p1 = pneg %p423_p0 }
  0x40   : > { %603 = dma.done.wait (%p424_p1), %s300_s27, 512  }
  0x41   : > { %605 = vsyncadd (%p424_p1), %s300_s27, 4294966784  ;;  %s21_s14 = sadd.s32 1, %s628_s14   ;;  %s783_s9 = smov %s612_s10 }
  0x42   : > { %p18_p2 = scmp.ge.s32.totalorder %s21_s14, 4   ;;  %s784_s10 = smov %s616_s11 }
  0x43   : > { %s785_s11 = smov %s703_s23  ;;  %s786_s12 = smov %s624_s13 }
  0x44   : > { %s787_s13 = smov %s789_s17  ;;  %20 = sbr.rel (!%p18_p2) target bundleno = 8 (0x8), region = 97 }
  0x49   :  { %306 = vsyncpa [#allocation4], 1 }
  0x4a   :  { %308 = vsyncpa [#allocation4 + $0x1], 1 }
  0x4b   :  { %309 = vsyncpa [#allocation7], 1 }
  0x4c   :  { %311 = vsyncpa [#allocation7 + $0x1], 1 }
  0x4d   :  { %312 = vsyncpa [#allocation5], 1 }
  0x4e   :  { %314 = vsyncpa [#allocation5 + $0x1], 1 }

</bundles_post_ra>
